<compile_context>
chip_gen: v6e
topology: v6e:2x2x1
jax: 0.10.0
libtpu: 0.0.40
codegen_flags: <defaults>
</compile_context>

<pallas_src>
import jax
import jax.numpy as jnp
from jax.experimental import pallas as pl
from jax.experimental.pallas import tpu as pltpu

EPS = 1e-5  # nn.LayerNorm default eps

_SUBLANE_PACK = {4: 8, 2: 16, 1: 32}  # dtype itemsize -> sublane packing


def _round_up(v, m):
    return -(-v // m) * m


def _vmem_capacity_bytes():
    """Per-core VMEM capacity; conservative 64 MiB (v7x) if the query fails."""
    try:
        cap = int(pltpu.get_tpu_info().vmem_capacity_bytes)
        if cap > 0:
            return cap
    except Exception:
        pass
    return 64 << 20


def _supports_single_buffering():
    try:
        pl.BlockSpec((8, 128), lambda i: (0, 0), pipeline_mode=pl.Buffered(1))
        return True
    except Exception:
        return False


_SINGLE_BUFFER_OK = _supports_single_buffering()


def _invariant_spec(shape, single_buffer):
    """BlockSpec for an operand whose block is identical at every grid step.

    Single-buffering (pl.Buffered(1)) halves its VMEM footprint — for the
    resident weight this is the difference between fitting and not fitting on
    v7x's 64 MiB/TC — and avoids redundant per-step DMAs.
    """
    index_map = lambda *_: (0,) * len(shape)
    if single_buffer:
        return pl.BlockSpec(shape, index_map, pipeline_mode=pl.Buffered(1))
    return pl.BlockSpec(shape, index_map)


def _call_with_fallback(run):
    """run(single_buffer: bool) -> out.  Retry with default double-buffered
    specs if Buffered(1) lowering is unsupported by this Pallas version."""
    if not _SINGLE_BUFFER_OK:
        return run(False)
    try:
        return run(True)
    except Exception:
        return run(False)


def _row_tile(requested, rows, dim, pack, per_row_bytes, tile_budget):
    """Pick a row-tile size (multiple of the sublane packing) within budget."""
    if requested is not None:
        t = max(pack, _round_up(requested, pack))
    else:
        # Memory-bound kernel: large row tiles amortize the ~0.35 us/step cost.
        target = 2048 if dim <= 1024 else 512
        t = max(pack, min(target, _round_up(rows, pack)))
    while t > pack and t * per_row_bytes > tile_budget:
        t = max(pack, ((t // 2) // pack) * pack)
    return min(t, _round_up(rows, pack))


def _vmem_limit(needed_bytes, capacity_bytes):
    # Always explicit (v5e's default scoped-VMEM limit is only 16 MiB); keep
    # ~15% headroom below the physical per-core capacity (generation-aware).
    return int(min(capacity_bytes * 0.85, max(needed_bytes * 1.25, 32 << 20)))


def _residual_resident_kernel(x_ref, w_ref, b_ref, gamma_ref, beta_ref, o_ref):
    """Fused Linear(dim, dim) + residual + LayerNorm; W fully VMEM-resident."""
    x = x_ref[...]  # native dtype -> MXU bf16 path with f32 accumulation
    sub = jnp.dot(x, w_ref[...], preferred_element_type=jnp.float32) + b_ref[...]
    y = x.astype(jnp.float32) + sub                       # residual add (f32)
    mean = jnp.mean(y, axis=-1, keepdims=True)            # LayerNorm (f32)
    centered = y - mean
    var = jnp.mean(centered * centered, axis=-1, keepdims=True)
    out = centered * jax.lax.rsqrt(var + EPS) * gamma_ref[...] + beta_ref[...]
    o_ref[...] = out.astype(o_ref.dtype)


def _residual_ktiled_kernel(xk_ref, xfull_ref, w_ref, b_ref, gamma_ref, beta_ref,
                            o_ref, acc_ref):
    """Same op with the weight K-tiled (dim too large to keep W resident,
    e.g. dim >= ~4096 bf16 on v7x).  acc_ref is an f32 (t, dim) accumulator."""
    k = pl.program_id(1)

    @pl.when(k == 0)
    def _init():
        acc_ref[...] = jnp.zeros_like(acc_ref)

    acc_ref[...] += jnp.dot(xk_ref[...], w_ref[...],
                            preferred_element_type=jnp.float32)

    @pl.when(k == pl.num_programs(1) - 1)
    def _finalize():
        y = acc_ref[...] + b_ref[...] + xfull_ref[...].astype(jnp.float32)
        mean = jnp.mean(y, axis=-1, keepdims=True)
        centered = y - mean
        var = jnp.mean(centered * centered, axis=-1, keepdims=True)
        out = centered * jax.lax.rsqrt(var + EPS) * gamma_ref[...] + beta_ref[...]
        o_ref[...] = out.astype(o_ref.dtype)


def residual_forward(x, w, b, gamma, beta, *, tile_rows=None, k_tile=None):
    """LayerNorm(x + x @ w + b) with affine (gamma, beta).  x: (batch, seq, dim)."""
    batch, seq, dim = x.shape
    rows = batch * seq
    x2 = x.reshape(rows, dim)

    x_item = x2.dtype.itemsize
    w_item = w.dtype.itemsize
    pack = _SUBLANE_PACK.get(x_item, 8)

    cap = _vmem_capacity_bytes()
    budget = int(cap * 0.80)

    # Pre-cast small params to f32 once (no per-step casts inside the kernel).
    b2 = jnp.asarray(b, jnp.float32).reshape(1, dim)
    g2 = jnp.asarray(gamma, jnp.float32).reshape(1, dim)
    be2 = jnp.asarray(beta, jnp.float32).reshape(1, dim)

    w_bufs = 1 if _SINGLE_BUFFER_OK else 2
    param_bytes = 3 * dim * 4 * w_bufs

    # Resident-W path budget: W + double-buffered x/out tiles + f32 intermediates.
    per_row_a = 2 * dim * x_item + 2 * dim * x_item + 4 * dim * 4
    fixed_a = dim * dim * w_item * w_bufs + param_bytes
    resident_fits = fixed_a + pack * per_row_a <= budget

    if k_tile is None and (resident_fits or dim % 128 != 0):
        # ---------------- Path A: weight fully VMEM-resident ----------------
        t = _row_tile(tile_rows, rows, dim, pack, per_row_a, budget - fixed_a)
        grid = (pl.cdiv(rows, t),)  # ragged last block: padded reads, masked writes
        vmem_limit = _vmem_limit(fixed_a + t * per_row_a, cap)

        def run(single_buffer):
            return pl.pallas_call(
                _residual_resident_kernel,
                out_shape=jax.ShapeDtypeStruct((rows, dim), x.dtype),
                grid_spec=pltpu.PrefetchScalarGridSpec(
                    num_scalar_prefetch=0,
                    grid=grid,
                    in_specs=[
                        pl.BlockSpec((t, dim), lambda i: (i, 0)),     # x row tile
                        _invariant_spec((dim, dim), single_buffer),   # W (resident)
                        _invariant_spec((1, dim), single_buffer),     # bias (f32)
                        _invariant_spec((1, dim), single_buffer),     # gamma (f32)
                        _invariant_spec((1, dim), single_buffer),     # beta (f32)
                    ],
                    out_specs=pl.BlockSpec((t, dim), lambda i: (i, 0)),
                ),
                compiler_params=pltpu.CompilerParams(
                    dimension_semantics=("parallel",),  # row tiles across TCs
                    vmem_limit_bytes=vmem_limit,
                ),
            )(x2, w, b2, g2, be2)

        out2 = _call_with_fallback(run)
    else:
        # ------------- Path B: weight K-tiled + f32 accumulator -------------
        if dim % 128 != 0:
            raise ValueError("K-tiled path requires dim to be a multiple of 128")

        def per_row_b(tk):
            # x K-block + x full row (residual) + out tile + f32 acc + intermediates
            return (2 * tk * x_item + 2 * dim * x_item + 2 * dim * x_item
                    + dim * 4 + 3 * dim * 4)

        if k_tile is not None:
            if dim % k_tile != 0 or k_tile % 128 != 0:
                raise ValueError("k_tile must divide dim and be a multiple of 128")
            tk = k_tile
        else:
            cands = [d for d in range(dim - 128, 0, -128) if dim % d == 0] or [dim]
            tk = cands[-1]
            for d in cands:
                if 2 * d * dim * w_item + param_bytes + pack * per_row_b(d) <= budget:
                    tk = d
                    break

        fixed_b = 2 * tk * dim * w_item + param_bytes
        t = _row_tile(tile_rows, rows, dim, pack, per_row_b(tk), budget - fixed_b)
        grid = (pl.cdiv(rows, t), dim // tk)  # reduction (K) axis last
        vmem_limit = _vmem_limit(fixed_b + t * per_row_b(tk), cap)

        def run(single_buffer):
            return pl.pallas_call(
                _residual_ktiled_kernel,
                out_shape=jax.ShapeDtypeStruct((rows, dim), x.dtype),
                grid_spec=pltpu.PrefetchScalarGridSpec(
                    num_scalar_prefetch=0,
                    grid=grid,
                    in_specs=[
                        pl.BlockSpec((t, tk), lambda i, kk: (i, kk)),    # x K-block
                        pl.BlockSpec((t, dim), lambda i, kk: (i, 0)),    # x full row
                        pl.BlockSpec((tk, dim), lambda i, kk: (kk, 0)),  # W K-slice (N full)
                        _invariant_spec((1, dim), single_buffer),        # bias (f32)
                        _invariant_spec((1, dim), single_buffer),        # gamma (f32)
                        _invariant_spec((1, dim), single_buffer),        # beta (f32)
                    ],
                    out_specs=pl.BlockSpec((t, dim), lambda i, kk: (i, 0)),
                    scratch_shapes=[pltpu.VMEM((t, dim), jnp.float32)],
                ),
                compiler_params=pltpu.CompilerParams(
                    dimension_semantics=("parallel", "arbitrary"),
                    vmem_limit_bytes=vmem_limit,
                ),
            )(x2, x2, w, b2, g2, be2)

        out2 = _call_with_fallback(run)

    return out2.reshape(batch, seq, dim)


def residual_reference(x, w, b, gamma, beta):
    """Pure-JAX reference (bf16 matmul with f32 accumulation, f32 residual + LN)."""
    batch, seq, dim = x.shape
    x2 = x.reshape(batch * seq, dim)
    sub = jnp.dot(x2, w, preferred_element_type=jnp.float32) + b.astype(jnp.float32)
    y = x2.astype(jnp.float32) + sub
    mean = jnp.mean(y, axis=-1, keepdims=True)
    var = jnp.mean((y - mean) ** 2, axis=-1, keepdims=True)
    out = (y - mean) * jax.lax.rsqrt(var + EPS)
    out = out * gamma.astype(jnp.float32) + beta.astype(jnp.float32)
    return out.astype(x.dtype).reshape(batch, seq, dim)


if __name__ == "__main__":
    key = jax.random.PRNGKey(0)

    def make_inputs(k, batch, seq, dim):
        kx, kw, kb, kg, kbe = jax.random.split(k, 5)
        x = jax.random.normal(kx, (batch, seq, dim), jnp.float32).astype(jnp.bfloat16)
        w = (jax.random.normal(kw, (dim, dim), jnp.float32)
             / jnp.sqrt(dim)).astype(jnp.bfloat16)
        b = 0.1 * jax.random.normal(kb, (dim,), jnp.float32)
        gamma = 1.0 + 0.01 * jax.random.normal(kg, (dim,), jnp.float32)
        beta = 0.01 * jax.random.normal(kbe, (dim,), jnp.float32)
        return x, w, b, gamma, beta

    k1, k2 = jax.random.split(key)

    # Case 1: resident-weight path; rows=50 with 16-row tiles exercises the
    # multi-step grid and the ragged (masked) last block.
    x, w, b, gamma, beta = make_inputs(k1, 5, 10, 128)
    out = jax.block_until_ready(residual_forward(x, w, b, gamma, beta, tile_rows=16))
    ref = residual_reference(x, w, b, gamma, beta)
    assert out.shape == x.shape
    assert jnp.allclose(out.astype(jnp.float32), ref.astype(jnp.float32),
                        atol=2e-2, rtol=2e-2), "resident-W path mismatch vs reference"

    # Case 2: K-tiled-weight path (the large-dim / v7x fallback), forced via
    # k_tile=128 at dim=256, with ragged rows (18 rows, 32-row tile).
    x, w, b, gamma, beta = make_inputs(k2, 2, 9, 256)
    out = jax.block_until_ready(residual_forward(x, w, b, gamma, beta, k_tile=128))
    ref = residual_reference(x, w, b, gamma, beta)
    assert out.shape == x.shape
    assert jnp.allclose(out.astype(jnp.float32), ref.astype(jnp.float32),
                        atol=2e-2, rtol=2e-2), "K-tiled path mismatch vs reference"

    print("KERNEL_OK")
</pallas_src>

<mosaic_0001>
module attributes {stable_mosaic.version = 11 : i64} {
  func.func @_residual_resident_kernel(%arg0: i32, %arg1: memref<16x128xbf16, #tpu.memory_space<vmem>>, %arg2: memref<128x128xbf16, #tpu.memory_space<vmem>>, %arg3: memref<1x128xf32, #tpu.memory_space<vmem>>, %arg4: memref<1x128xf32, #tpu.memory_space<vmem>>, %arg5: memref<1x128xf32, #tpu.memory_space<vmem>>, %arg6: memref<16x128xbf16, #tpu.memory_space<vmem>>) attributes {dimension_semantics = [#tpu.dimension_semantics<parallel>], iteration_bounds = array<i64: 4>, scalar_prefetch = 0 : i64, scratch_operands = 0 : i64, tpu.core_type = #tpu.core_type<tc>, window_params = [{transform_indices = @transform_0, window_bounds = array<i64: 16, 128>}, {pipeline_mode = #tpu.pipeline_mode<synchronous>, transform_indices = @transform_1, window_bounds = array<i64: 128, 128>}, {pipeline_mode = #tpu.pipeline_mode<synchronous>, transform_indices = @transform_2, window_bounds = array<i64: 1, 128>}, {pipeline_mode = #tpu.pipeline_mode<synchronous>, transform_indices = @transform_3, window_bounds = array<i64: 1, 128>}, {pipeline_mode = #tpu.pipeline_mode<synchronous>, transform_indices = @transform_4, window_bounds = array<i64: 1, 128>}, {transform_indices = @transform_5, window_bounds = array<i64: 16, 128>}]} {
    %c0 = arith.constant 0 : index
    %c0_0 = arith.constant 0 : index
    %0 = vector.load %arg1[%c0, %c0_0] : memref<16x128xbf16, #tpu.memory_space<vmem>>, vector<16x128xbf16>
    %c0_1 = arith.constant 0 : index
    %c0_2 = arith.constant 0 : index
    %1 = vector.load %arg2[%c0_1, %c0_2] : memref<128x128xbf16, #tpu.memory_space<vmem>>, vector<128x128xbf16>
    %cst = arith.constant dense<0.000000e+00> : vector<16x128xf32>
    %2 = tpu.matmul %0, %1, %cst {dimension_numbers = #tpu.dot_dimension_numbers<[1], [0], [0], [1], [0, 0, 1, 1], [], []>} : vector<16x128xbf16>, vector<128x128xbf16>, vector<16x128xf32> -> vector<16x128xf32>
    %c0_3 = arith.constant 0 : index
    %c0_4 = arith.constant 0 : index
    %3 = vector.load %arg3[%c0_3, %c0_4] : memref<1x128xf32, #tpu.memory_space<vmem>>, vector<1x128xf32>
    %4 = vector.broadcast %3 : vector<1x128xf32> to vector<16x128xf32>
    %5 = arith.addf %2, %4 : vector<16x128xf32>
    %6 = arith.extf %0 : vector<16x128xbf16> to vector<16x128xf32>
    %7 = arith.addf %6, %5 : vector<16x128xf32>
    %cst_5 = arith.constant dense<0.000000e+00> : vector<16xf32>
    %8 = vector.multi_reduction <add>, %7, %cst_5 [1] : vector<16x128xf32> to vector<16xf32>
    %9 = vector.shape_cast %8 : vector<16xf32> to vector<16x1xf32>
    %cst_6 = arith.constant 1.280000e+02 : f32
    %10 = vector.broadcast %cst_6 : f32 to vector<16x1xf32>
    %11 = arith.divf %9, %10 : vector<16x1xf32>
    %12 = vector.broadcast %11 : vector<16x1xf32> to vector<16x128xf32>
    %13 = arith.subf %7, %12 : vector<16x128xf32>
    %14 = arith.mulf %13, %13 : vector<16x128xf32>
    %cst_7 = arith.constant dense<0.000000e+00> : vector<16xf32>
    %15 = vector.multi_reduction <add>, %14, %cst_7 [1] : vector<16x128xf32> to vector<16xf32>
    %16 = vector.shape_cast %15 : vector<16xf32> to vector<16x1xf32>
    %cst_8 = arith.constant 1.280000e+02 : f32
    %17 = vector.broadcast %cst_8 : f32 to vector<16x1xf32>
    %18 = arith.divf %16, %17 : vector<16x1xf32>
    %cst_9 = arith.constant 9.99999974E-6 : f32
    %19 = vector.broadcast %cst_9 : f32 to vector<16x1xf32>
    %20 = arith.addf %18, %19 : vector<16x1xf32>
    %21 = math.rsqrt %20 : vector<16x1xf32>
    %22 = vector.broadcast %21 : vector<16x1xf32> to vector<16x128xf32>
    %23 = arith.mulf %13, %22 : vector<16x128xf32>
    %c0_10 = arith.constant 0 : index
    %c0_11 = arith.constant 0 : index
    %24 = vector.load %arg4[%c0_10, %c0_11] : memref<1x128xf32, #tpu.memory_space<vmem>>, vector<1x128xf32>
    %25 = vector.broadcast %24 : vector<1x128xf32> to vector<16x128xf32>
    %26 = arith.mulf %23, %25 : vector<16x128xf32>
    %c0_12 = arith.constant 0 : index
    %c0_13 = arith.constant 0 : index
    %27 = vector.load %arg5[%c0_12, %c0_13] : memref<1x128xf32, #tpu.memory_space<vmem>>, vector<1x128xf32>
    %28 = vector.broadcast %27 : vector<1x128xf32> to vector<16x128xf32>
    %29 = arith.addf %26, %28 : vector<16x128xf32>
    %30 = arith.truncf %29 : vector<16x128xf32> to vector<16x128xbf16>
    %c0_14 = arith.constant 0 : index
    %c0_15 = arith.constant 0 : index
    %31 = vector.load %arg6[%c0_14, %c0_15] : memref<16x128xbf16, #tpu.memory_space<vmem>>, vector<16x128xbf16>
    tpu.vector_store %arg6[%c0_14, %c0_15], %30 {strides = array<i32>} : memref<16x128xbf16, #tpu.memory_space<vmem>>, vector<16x128xbf16>,
    return
  }
  func.func @transform_0(%arg0: i32) -> (i32, i32) {
    %c0_i32 = arith.constant 0 : i32
    %c0_i32_0 = arith.constant 0 : i32
    return %arg0, %c0_i32 : i32, i32
  }
  func.func @transform_1(%arg0: i32) -> (i32, i32) {
    %c0_i32 = arith.constant 0 : i32
    %c0_i32_0 = arith.constant 0 : i32
    %c0_i32_1 = arith.constant 0 : i32
    return %c0_i32, %c0_i32_0 : i32, i32
  }
  func.func @transform_2(%arg0: i32) -> (i32, i32) {
    %c0_i32 = arith.constant 0 : i32
    %c0_i32_0 = arith.constant 0 : i32
    %c0_i32_1 = arith.constant 0 : i32
    return %c0_i32, %c0_i32_0 : i32, i32
  }
  func.func @transform_3(%arg0: i32) -> (i32, i32) {
    %c0_i32 = arith.constant 0 : i32
    %c0_i32_0 = arith.constant 0 : i32
    %c0_i32_1 = arith.constant 0 : i32
    return %c0_i32, %c0_i32_0 : i32, i32
  }
  func.func @transform_4(%arg0: i32) -> (i32, i32) {
    %c0_i32 = arith.constant 0 : i32
    %c0_i32_0 = arith.constant 0 : i32
    %c0_i32_1 = arith.constant 0 : i32
    return %c0_i32, %c0_i32_0 : i32, i32
  }
  func.func @transform_5(%arg0: i32) -> (i32, i32) {
    %c0_i32 = arith.constant 0 : i32
    %c0_i32_0 = arith.constant 0 : i32
    return %arg0, %c0_i32 : i32, i32
  }
}

module attributes {stable_mosaic.version = 11 : i64} {
  func.func @_residual_resident_kernel(%arg0: i32, %arg1: memref<16x128xbf16, #tpu.memory_space<vmem>>, %arg2: memref<128x128xbf16, #tpu.memory_space<vmem>>, %arg3: memref<1x128xf32, #tpu.memory_space<vmem>>, %arg4: memref<1x128xf32, #tpu.memory_space<vmem>>, %arg5: memref<1x128xf32, #tpu.memory_space<vmem>>, %arg6: memref<16x128xbf16, #tpu.memory_space<vmem>>) attributes {dimension_semantics = [#tpu.dimension_semantics<parallel>], iteration_bounds = array<i64: 4>, scalar_prefetch = 0 : i64, scratch_operands = 0 : i64, tpu.core_type = #tpu.core_type<tc>, window_params = [{transform_indices = @transform_0, window_bounds = array<i64: 16, 128>}, {pipeline_mode = #tpu.pipeline_mode<synchronous>, transform_indices = @transform_1, window_bounds = array<i64: 128, 128>}, {pipeline_mode = #tpu.pipeline_mode<synchronous>, transform_indices = @transform_2, window_bounds = array<i64: 1, 128>}, {pipeline_mode = #tpu.pipeline_mode<synchronous>, transform_indices = @transform_3, window_bounds = array<i64: 1, 128>}, {pipeline_mode = #tpu.pipeline_mode<synchronous>, transform_indices = @transform_4, window_bounds = array<i64: 1, 128>}, {transform_indices = @transform_5, window_bounds = array<i64: 16, 128>}]} {
    %c0 = arith.constant 0 : index
    %c0_0 = arith.constant 0 : index
    %0 = vector.load %arg1[%c0, %c0_0] : memref<16x128xbf16, #tpu.memory_space<vmem>>, vector<16x128xbf16>
    %c0_1 = arith.constant 0 : index
    %c0_2 = arith.constant 0 : index
    %1 = vector.load %arg2[%c0_1, %c0_2] : memref<128x128xbf16, #tpu.memory_space<vmem>>, vector<128x128xbf16>
    %cst = arith.constant dense<0.000000e+00> : vector<16x128xf32>
    %2 = tpu.matmul %0, %1, %cst {dimension_numbers = #tpu.dot_dimension_numbers<[1], [0], [0], [1], [0, 0, 1, 1], [], []>} : vector<16x128xbf16>, vector<128x128xbf16>, vector<16x128xf32> -> vector<16x128xf32>
    %c0_3 = arith.constant 0 : index
    %c0_4 = arith.constant 0 : index
    %3 = vector.load %arg3[%c0_3, %c0_4] : memref<1x128xf32, #tpu.memory_space<vmem>>, vector<1x128xf32>
    %4 = vector.broadcast %3 : vector<1x128xf32> to vector<16x128xf32>
    %5 = arith.addf %2, %4 : vector<16x128xf32>
    %6 = arith.extf %0 : vector<16x128xbf16> to vector<16x128xf32>
    %7 = arith.addf %6, %5 : vector<16x128xf32>
    %cst_5 = arith.constant dense<0.000000e+00> : vector<16xf32>
    %8 = vector.multi_reduction <add>, %7, %cst_5 [1] : vector<16x128xf32> to vector<16xf32>
    %9 = vector.shape_cast %8 : vector<16xf32> to vector<16x1xf32>
    %cst_6 = arith.constant 1.280000e+02 : f32
    %10 = vector.broadcast %cst_6 : f32 to vector<16x1xf32>
    %11 = arith.divf %9, %10 : vector<16x1xf32>
    %12 = vector.broadcast %11 : vector<16x1xf32> to vector<16x128xf32>
    %13 = arith.subf %7, %12 : vector<16x128xf32>
    %14 = arith.mulf %13, %13 : vector<16x128xf32>
    %cst_7 = arith.constant dense<0.000000e+00> : vector<16xf32>
    %15 = vector.multi_reduction <add>, %14, %cst_7 [1] : vector<16x128xf32> to vector<16xf32>
    %16 = vector.shape_cast %15 : vector<16xf32> to vector<16x1xf32>
    %cst_8 = arith.constant 1.280000e+02 : f32
    %17 = vector.broadcast %cst_8 : f32 to vector<16x1xf32>
    %18 = arith.divf %16, %17 : vector<16x1xf32>
    %cst_9 = arith.constant 9.99999974E-6 : f32
    %19 = vector.broadcast %cst_9 : f32 to vector<16x1xf32>
    %20 = arith.addf %18, %19 : vector<16x1xf32>
    %21 = math.rsqrt %20 : vector<16x1xf32>
    %22 = vector.broadcast %21 : vector<16x1xf32> to vector<16x128xf32>
    %23 = arith.mulf %13, %22 : vector<16x128xf32>
    %c0_10 = arith.constant 0 : index
    %c0_11 = arith.constant 0 : index
    %24 = vector.load %arg4[%c0_10, %c0_11] : memref<1x128xf32, #tpu.memory_space<vmem>>, vector<1x128xf32>
    %25 = vector.broadcast %24 : vector<1x128xf32> to vector<16x128xf32>
    %26 = arith.mulf %23, %25 : vector<16x128xf32>
    %c0_12 = arith.constant 0 : index
    %c0_13 = arith.constant 0 : index
    %27 = vector.load %arg5[%c0_12, %c0_13] : memref<1x128xf32, #tpu.memory_space<vmem>>, vector<1x128xf32>
    %28 = vector.broadcast %27 : vector<1x128xf32> to vector<16x128xf32>
    %29 = arith.addf %26, %28 : vector<16x128xf32>
    %30 = arith.truncf %29 : vector<16x128xf32> to vector<16x128xbf16>
    %c0_14 = arith.constant 0 : index
    %c0_15 = arith.constant 0 : index
    %31 = vector.load %arg6[%c0_14, %c0_15] : memref<16x128xbf16, #tpu.memory_space<vmem>>, vector<16x128xbf16>
    tpu.vector_store %arg6[%c0_14, %c0_15], %30 {strides = array<i32>} : memref<16x128xbf16, #tpu.memory_space<vmem>>, vector<16x128xbf16>,
    return
  }
  func.func @transform_0(%arg0: i32) -> (i32, i32) {
    %c0_i32 = arith.constant 0 : i32
    %c0_i32_0 = arith.constant 0 : i32
    return %arg0, %c0_i32 : i32, i32
  }
  func.func @transform_1(%arg0: i32) -> (i32, i32) {
    %c0_i32 = arith.constant 0 : i32
    %c0_i32_0 = arith.constant 0 : i32
    %c0_i32_1 = arith.constant 0 : i32
    return %c0_i32, %c0_i32_0 : i32, i32
  }
  func.func @transform_2(%arg0: i32) -> (i32, i32) {
    %c0_i32 = arith.constant 0 : i32
    %c0_i32_0 = arith.constant 0 : i32
    %c0_i32_1 = arith.constant 0 : i32
    return %c0_i32, %c0_i32_0 : i32, i32
  }
  func.func @transform_3(%arg0: i32) -> (i32, i32) {
    %c0_i32 = arith.constant 0 : i32
    %c0_i32_0 = arith.constant 0 : i32
    %c0_i32_1 = arith.constant 0 : i32
    return %c0_i32, %c0_i32_0 : i32, i32
  }
  func.func @transform_4(%arg0: i32) -> (i32, i32) {
    %c0_i32 = arith.constant 0 : i32
    %c0_i32_0 = arith.constant 0 : i32
    %c0_i32_1 = arith.constant 0 : i32
    return %c0_i32, %c0_i32_0 : i32, i32
  }
  func.func @transform_5(%arg0: i32) -> (i32, i32) {
    %c0_i32 = arith.constant 0 : i32
    %c0_i32_0 = arith.constant 0 : i32
    return %arg0, %c0_i32 : i32, i32
  }
}

</mosaic_0001>

<bundles_post_ra>
// kernel: tpu_custom_call.1
= control target key start
LH: loop header
LB: loop body
LE: loop exit
PB: predicated region body
PF: predicated region fallthrough
CT: control target
= control target key end

     0   :  { %10 = vsyncpa [#allocation3], 0  ;;  %s1067_s0 = inlined_call_operand.hbm [shape: bf16[50,128], index: 0, kind: input, shape index: {}]   ;;  %s1068_s1 = inlined_call_operand.hbm [shape: bf16[128,128], index: 1, kind: input, shape index: {}]   ;;  %s1069_s2 = inlined_call_operand.vmem [shape: f32[1,128], index: 2, kind: input, shape index: {}]   ;;  %s1070_s3 = inlined_call_operand.vmem [shape: f32[1,128], index: 3, kind: input, shape index: {}]   ;;  %s1071_s4 = inlined_call_operand.vmem [shape: f32[1,128], index: 4, kind: input, shape index: {}]   ;;  %s1072_s5 = inlined_call_operand.hbm [shape: bf16[50,128], index: 5, kind: output, shape index: {}]  }
   0x1   :  { %12 = vsyncpa [#allocation3 + $0x1], 0 }
   0x2   :  { %13 = vsyncpa [#allocation6], 0 }
   0x3   :  { %14 = vsyncpa [#allocation4], 0 }
   0x4   :  { %16 = vsyncpa [#allocation4 + $0x1], 0  ;;  %s864_s18 = smov 0   ;;  %s866_s19 = smov 0  }
   0x5   :  { %s868_s20 = smov 0   ;;  %s870_s21 = smov 0  }
   0x6 LB: > { %s885_s22 = sadd.s32 4294967295, %s821_s21   ;;  %s553_s23 = sadd.s32 4294967294, %s821_s21   ;;  %s821_s21 = sphi %s870_s21, %s1085_s21   ;;  %s817_s20 = sphi %s868_s20, %s1084_s20   ;;  %s813_s19 = sphi %s866_s19, %s1083_s19   ;;  %s809_s18 = sphi %s864_s18, %s1082_s18  }
   0x7   : > { %s889_s24 = sadd.s32 1, %s821_s21   ;;  %s29_s25 = sadd.s32 1, %s817_s20 }
   0x8   : > { %s26_s26 = ssub.s32 %s821_s21, %s889_s24  ;;  %p36_p0 = scmp.ne.s32.totalorder %s817_s20, %s813_s19 }
   0x9   : > { %p27_p1 = scmp.eq.s32.totalorder %s26_s26, 0  ;;  %p37_p2 = scmp.eq.s32.totalorder %s821_s21, 0 }
   0xa   : > { %p42_p3 = scmp.ne.s32.totalorder %s813_s19, %s809_s18  ;;  %p43_p4 = scmp.eq.s32.totalorder %s885_s22, 0 }
   0xb   : > { %s901_s27 = scalar_select %p27_p1, %s817_s20, %s29_s25  }
   0xc   : > { %p903_p5 = por %p37_p2, %p36_p0  ;;  %p909_p6 = por %p43_p4, %p42_p3 }
   0xd   : > { %p150_p7 = scmp.eq.s32.totalorder %s885_s22, 3  ;;  %p156_p8 = scmp.eq.s32.totalorder %s553_s23, 3 }
   0xe   : > { %s1075_s29 = scalar_select %p909_p6, 1, 0 }
   0xf   : > { %p554_p9 = scmp.ge.s32.totalorder %s821_s21, 1  ;;  %p163_p10 = scmp.lt.s32.totalorder %s821_s21, 5 }
  0x10   : > { %p916_p11 = por %p150_p7, %p36_p0  ;;  %p920_p12 = por %p156_p8, %p42_p3 }
  0x11   : > { %p924_p13 = pnand %p554_p9, %p163_p10  ;;  %s823_s8 = smov [#allocation5]  }
  0x12   : > { %s1076_s30 = scalar_select %p916_p11, 1, 0 }
  0x13   : > { %s1077_s6 = scalar_select %p920_p12, 1, 0 }
  0x14   : > { %p635_p1 = pneg %p924_p13  ;;  %s175_s9 = sshll.u32 %s823_s8, 4  ;;  %s176_s9 = int_to_ptr.vmem [resolvable:$true] %s175_s9 }
  0x15   : > { %s712_s10 = scalar_lea.vmem %s176_s9, 1024  ;;  %p720_p8 = scmp.lt.s32.totalorder %s176_s9, %s176_s9 }
  0x16   : > { %p636_p2 = pnand %p635_p1, %p43_p4  ;;  %p713_p7 = scmp.ne.s32.totalorder %s176_s9, %s712_s10 }
  0x17   : > { %p721_p6 = scmp.lt.s32.totalorder %s712_s10, %s712_s10 }
  0x18   : > { %p703_p0 = pneg %p636_p2 }
  0x19   : > { %p722_p12 = por %p721_p6, %p720_p8 }
  0x1a   : > { %p715_p11 = pnand %p713_p7, %p703_p0 }
  0x1c   : > { %p716_p3 = pneg %p715_p11 }
  0x1e   : > { %p723_p9 = pnand %p722_p12, %p716_p3 }
  0x20   : > { %726 = shalt.err (!%p723_p9)
}
  0x21   : > { %s824_s11 = smov 64   ;;  %s825_s12 = smov 4  }
  0x22   : > { %638 = dma.hbm_to_vmem [thread:$0]  (!%p636_p2), %s1068_s1, 1024, %s176_s9, [#allocation6], %s824_s11, %s824_s11, %s825_s12  }
  0x23   : > { %p556_p10 = scmp.ge.s32.totalorder %s821_s21, 4 }
  0x25   : > { %194 = sbr.rel (%p556_p10) target bundleno = 74 (0x4a), region = 32 }
  0x2a   : > { %197 = sbr.rel (!%p903_p5) target bundleno = 74 (0x4a), region = 36  ;;  %s198_s15 = sand.u32 (%p903_p5), 1, %s817_s20  }
  0x2b   : > { %s558_s16 = sshll.u32 (%p903_p5), %s821_s21, 1  ;;  %s557_s17 = sshll.u32 (%p903_p5), %s198_s15, 3 }
  0x2c   : > { %s204_s23 = ssub.s32 (%p903_p5), 7, %s558_s16  ;;  %s943_s8 = scalar_lea.sflag (%p903_p5), [#allocation3], %s198_s15 }
  0x2d   : > { %p205_p6 = scmp.lt.s32.totalorder (%p903_p5), %s204_s23, 2  ;;  %s202_s9 = scalar_lea.vmem (%p903_p5), [#allocation2], %s557_s17 }
  0x2f   : > { %s1087_s23 = smov (!%p205_p6, %s204_s23), 2 }
  0x30   : > { %s940_s25 = sshll.u32 %s1087_s23, 6 }
  0x31   : > { %s209_s26 = ssub.s32 128, %s940_s25 }
  0x32   : > { %210 = vsyncadd %s943_s8, %s209_s26  ;;  %p560_p5 = scmp.ne.s32.totalorder %s940_s25, 0  ;;  %s591_s28 = sshll.u32 %s821_s21, 7 }
  0x33   : > { %s951_s12 = scalar_lea.hbm %s1067_s0, %s591_s28  ;;  %s215_s13 = sshll.u32 %s202_s9, 4  ;;  %s953_s13 = int_to_ptr.vmem [resolvable:$true] %s215_s13 }
  0x34   : > { %s727_s14 = scalar_lea.hbm %s951_s12, %s940_s25  ;;  %s731_s17 = scalar_lea.hbm %s1067_s0, 448 }
  0x35   : > { %p728_p11 = scmp.ne.s32.totalorder %s951_s12, %s727_s14  ;;  %p732_p2 = scmp.lt.s32.totalorder %s951_s12, %s1067_s0 }
  0x36   : > { %p733_p0 = scmp.lt.s32.totalorder %s731_s17, %s727_s14 }
  0x37   : > { %p729_p12 = pnand %p728_p11, %p560_p5 }
  0x38   : > { %p734_p7 = por %p733_p0, %p732_p2 }
  0x39   : > { %p730_p1 = pneg %p729_p12 }
  0x3b   : > { %p735_p3 = pnand %p734_p7, %p730_p1 }
  0x3d   : > { %738 = shalt.err (!%p735_p3)
}
  0x3e   : > { %s739_s9 = scalar_lea.vmem %s953_s13, %s940_s25  ;;  %s826_s28 = smov [#allocation2]  }
  0x3f   : > { %p740_p8 = scmp.ne.s32.totalorder %s953_s13, %s739_s9  ;;  %s743_s10 = sshll.u32 %s826_s28, 4  ;;  %s744_s10 = int_to_ptr.vmem [resolvable:$false] %s743_s10 }
  0x40   : > { %s745_s11 = scalar_lea.vmem %s744_s10, 256  ;;  %p746_p6 = scmp.lt.s32.totalorder %s953_s13, %s744_s10 }
  0x41   : > { %p741_p9 = pnand %p740_p8, %p560_p5  ;;  %p747_p11 = scmp.lt.s32.totalorder %s745_s11, %s739_s9 }
  0x43   : > { %p742_p10 = pneg %p741_p9  ;;  %p748_p12 = por %p747_p11, %p746_p6 }
  0x45   : > { %p749_p2 = pnand %p748_p12, %p742_p10 }
  0x47   : > { %752 = shalt.err (!%p749_p2)
}
  0x48   : > { %s827_s14 = smov 64   ;;  %s828_s15 = smov 4  }
  0x49   : > { %221 = dma.hbm_to_vmem [thread:$0]  (%p560_p5), %s951_s12, %s940_s25, %s953_s13, %s943_s8, %s827_s14, %s827_s14, %s828_s15  }
  0x4a PF: > { %227 = sbr.rel (%p924_p13) target bundleno = 652 (0x28c), region = 40  ;;  %s982_s16 = sand.u32 (!%p924_p13), 1, %s813_s19  }
  0x4b   : > { %s565_s17 = sshll.u32 (!%p924_p13), %s982_s16, 3  ;;  %s230_s23 = scalar_lea.sflag (!%p924_p13), [#allocation3], %s982_s16 }
  0x4c   : > { %s233_s26 = scalar_lea.vmem (!%p924_p13), [#allocation2], %s565_s17  ;;  %p1079_p1 = scmp.ne.s32.totalorder (!%p924_p13), %s1075_s29, 0 }
  0x4f   : > { %796 = dma.done.wait (%p1079_p1), %s230_s23, 128  }
  0x50   : > { %798 = vsyncadd (%p1079_p1), %s230_s23, 4294967168 }
  0x51   : > { %800 = dma.done.wait (%p43_p4), [#allocation6], 1024  }
  0x52   : > { %802 = vsyncadd (%p43_p4), [#allocation6], 4294966272  ;;  %v829_v0 = vmov 0.0   ;;  %vm830_vm0 = vmmov 0   ;;  %v687_v1 = vld [vmem:[#allocation5 + $0x38] sm:$0xff]   ;;  %v688_v2 = vld [vmem:[#allocation5 + $0x30] sm:$0xff]  }
  0x53   : > { %609 = vmatprep.subr.bf16.mxu0 %v829_v0  ;;  %625 = vmatprep.mubr.msk.bf16.mxu0 %vm830_vm0, %v829_v0  ;;  %v689_v3 = vld [vmem:[#allocation5 + $0x28] sm:$0xff]   ;;  %v690_v4 = vld [vmem:[#allocation5 + $0x20] sm:$0xff]   ;;  %v691_v5 = vld [vmem:[#allocation5 + $0x18] sm:$0xff]   ;;  %s263_s9 = scalar_lea.vmem [#allocation7], %s565_s17  ;;  %s451_s28 = scalar_lea.sflag [#allocation4], %s982_s16 }
  0x54   : > { %610 = vmatpush3.bf16.msra.mxu0 %v687_v1  ;;  %v692_v6 = vld [vmem:[#allocation5 + $0x10] sm:$0xff]   ;;  %v693_v7 = vld [vmem:[#allocation5 + $0x8] sm:$0xff]   ;;  %v694_v8 = vld [vmem:[#allocation5] sm:$0xff]   ;;  %p1080_p4 = scmp.ne.s32.totalorder %s1076_s30, 0 }
  0x55   : > { %611 = vmatprep.subr.bf16.mxu0 %v829_v0  ;;  %v275_v9 = vld [vmem:[%s233_s26] sm:$0xff]   ;;  %s583_s10 = sshll.u32 (%p1080_p4), %s885_s22, 1 }
  0x56   : > { %v568_v10 = vld [vmem:[%s1069_s2] ss:$0 sm:$0xff]  ;;  %v395_v11 = vunpack.c.l.bf16 %v275_v9  ;;  %v396_v16 = vunpack.c.h.bf16 %v275_v9  ;;  %s459_s11 = ssub.s32 (%p1080_p4), 7, %s583_s10 }
  0x57   : > { %v578_v37 = vld [vmem:[%s1070_s3] ss:$0 sm:$0xff]  ;;  %p460_p13 = scmp.lt.s32.totalorder (%p1080_p4), %s459_s11, 2 }
  0x58   : > { %612 = vmatpush3.bf16.msra.mxu0 %v688_v2  ;;  %v579_v41 = vld [vmem:[%s1071_s4] ss:$0 sm:$0xff] }
  0x59   : > { %613 = vmatprep.subr.bf16.mxu0 %v829_v0 }
  0x5c   : > { %614 = vmatpush3.bf16.msra.mxu0 %v689_v3 }
  0x5d   : > { %615 = vmatprep.subr.bf16.mxu0 %v829_v0 }
  0x60   : > { %616 = vmatpush3.bf16.msra.mxu0 %v690_v4 }
  0x61   : > { %617 = vmatprep.subr.bf16.mxu0 %v829_v0 }
  0x64   : > { %618 = vmatpush3.bf16.msra.mxu0 %v691_v5 }
  0x65   : > { %619 = vmatprep.subr.bf16.mxu0 %v829_v0 }
  0x68   : > { %620 = vmatpush3.bf16.msra.mxu0 %v692_v6 }
  0x69   : > { %621 = vmatprep.subr.bf16.mxu0 %v829_v0 }
  0x6c   : > { %622 = vmatpush3.bf16.msra.mxu0 %v693_v7 }
  0x6d   : > { %623 = vmatprep.subr.bf16.mxu0 %v829_v0 }
  0x70   : > { %624 = vmatpush3.bf16.msra.mxu0 %v694_v8 }
  0x73   : > { %626 = vmatmul.mubr.bf16.vlgmr.msra.gmra.mxu0 %v275_v9 }
 0x133   : > { %v388_v12 = vpop.f32.mrf.mxu0 }
 0x134   : > { %v389_v13 = vadd.f32 %v568_v10, %v388_v12 }
 0x135   : > { %v627_v14 = vpop.f32.mrf.mxu0 }
 0x136   : > { %v397_v15 = vadd.f32 %v395_v11, %v389_v13 }
 0x137   : > { %v391_v17 = vpop.f32.mrf.mxu0 }
 0x138   : > { %v392_v18 = vadd.f32 %v568_v10, %v391_v17  ;;  %399 = vadd.xlane.f32.xlu0 %v397_v15 }
 0x139   : > { %v628_v19 = vpop.f32.mrf.mxu0 }
 0x13a   : > { %v398_v20 = vadd.f32 %v396_v16, %v392_v18 }
 0x13c   : > { %401 = vadd.xlane.f32.xlu0 %v398_v20 }
 0x1c1   : > { %v400_v21 = vpop.xlane.xlu0 %399 }
 0x1c2   : > { %v404_v22 = vmul.f32 0.0078125, %v400_v21 }
 0x1c4   : > { %v406_v23 = vsub.f32 %v397_v15, %v404_v22 }
 0x1c5   : > { %v402_v24 = vpop.xlane.xlu0 %401 }
 0x1c6   : > { %v405_v25 = vmul.f32 0.0078125, %v402_v24  ;;  %v408_v26 = vmul.f32 %v406_v23, %v406_v23 }
 0x1c8   : > { %v407_v27 = vsub.f32 %v398_v20, %v405_v25  ;;  %410 = vadd.xlane.f32.xlu1 %v408_v26 }
 0x1ca   : > { %v409_v28 = vmul.f32 %v407_v27, %v407_v27 }
 0x1cc   : > { %412 = vadd.xlane.f32.xlu1 %v409_v28 }
 0x251   : > { %v411_v29 = vpop.xlane.xlu1 %410 }
 0x252   : > { %v414_v30 = vmul.f32 0.0078125, %v411_v29 }
 0x254   : > { %v416_v31 = vadd.f32 1e-05, %v414_v30 }
 0x255   : > { %v413_v32 = vpop.xlane.xlu1 %412 }
 0x256   : > { %697 = vrsqrt.f32 %v416_v31  ;;  %v415_v33 = vmul.f32 0.0078125, %v413_v32 }
 0x258   : > { %v417_v34 = vadd.f32 1e-05, %v415_v33 }
 0x25a   : > { %699 = vrsqrt.f32 %v417_v34 }
 0x263   : > { %v698_v35 = vpop.eup %697 }
 0x264   : > { %v420_v36 = vmul.f32 %v698_v35, %v406_v23 }
 0x266   : > { %v429_v39 = vmul.f32 %v578_v37, %v420_v36 }
 0x267   : > { %v700_v38 = vpop.eup %699 }
 0x268   : > { %v421_v40 = vmul.f32 %v700_v38, %v407_v27  ;;  %v438_v43 = vadd.f32 %v579_v41, %v429_v39 }
 0x26a   : > { %v430_v42 = vmul.f32 %v578_v37, %v421_v40 }
 0x26c   : > { %v439_v44 = vadd.f32 %v579_v41, %v430_v42  ;;  %457 = sbr.rel (!%p1080_p4) target bundleno = 652 (0x28c), region = 52 }
 0x26e   : > { %v598_v45 = vpack.c.bf16 %v439_v44, %v438_v43 }
 0x270   : > { %599 = vst [vmem:[%s263_s9] sm:$0xff] %v598_v45  }
 0x271   : > { %s1089_s11 = smov (!%p460_p13, %s459_s11), 2 }
 0x272   : > { %s1011_s14 = sshll.u32 %s1089_s11, 6 }
 0x273   : > { %s464_s15 = ssub.s32 128, %s1011_s14 }
 0x274   : > { %465 = vsyncadd %s451_s28, %s464_s15  ;;  %p585_p5 = scmp.ne.s32.totalorder %s1011_s14, 0  ;;  %s594_s17 = sshll.u32 %s885_s22, 7 }
 0x275   : > { %s1021_s26 = scalar_lea.hbm %s1072_s5, %s594_s17  ;;  %s470_s29 = sshll.u32 %s263_s9, 4  ;;  %s1023_s29 = int_to_ptr.vmem [resolvable:$true] %s470_s29 }
 0x276   : > { %s753_s7 = scalar_lea.vmem %s1023_s29, %s1011_s14  ;;  %s831_s25 = smov [#allocation7]  }
 0x277   : > { %p754_p0 = scmp.ne.s32.totalorder %s1023_s29, %s753_s7  ;;  %s757_s8 = sshll.u32 %s831_s25, 4  ;;  %s758_s8 = int_to_ptr.vmem [resolvable:$false] %s757_s8 }
 0x278   : > { %s759_s22 = scalar_lea.vmem %s758_s8, 256  ;;  %p760_p8 = scmp.lt.s32.totalorder %s1023_s29, %s758_s8 }
 0x279   : > { %p755_p7 = pnand %p754_p0, %p585_p5  ;;  %p761_p9 = scmp.lt.s32.totalorder %s759_s22, %s753_s7 }
 0x27b   : > { %p756_p3 = pneg %p755_p7  ;;  %p762_p10 = por %p761_p9, %p760_p8 }
 0x27d   : > { %p763_p6 = pnand %p762_p10, %p756_p3 }
 0x27f   : > { %766 = shalt.err (!%p763_p6)
}
 0x280   : > { %s767_s12 = scalar_lea.hbm %s1021_s26, %s1011_s14  ;;  %s771_s10 = scalar_lea.hbm %s1072_s5, 448 }
 0x281   : > { %p768_p11 = scmp.ne.s32.totalorder %s1021_s26, %s767_s12  ;;  %p772_p1 = scmp.lt.s32.totalorder %s1021_s26, %s1072_s5 }
 0x282   : > { %p773_p4 = scmp.lt.s32.totalorder %s771_s10, %s767_s12 }
 0x283   : > { %p769_p12 = pnand %p768_p11, %p585_p5 }
 0x284   : > { %p774_p13 = por %p773_p4, %p772_p1 }
 0x285   : > { %p770_p2 = pneg %p769_p12 }
 0x287   : > { %p775_p0 = pnand %p774_p13, %p770_p2 }
 0x289   : > { %778 = shalt.err (!%p775_p0)
}
 0x28a   : > { %s832_s17 = smov 64   ;;  %s833_s30 = smov 4  }
 0x28b   : > { %476 = dma.vmem_to_hbm [thread:$0]  (%p585_p5), %s1023_s29, %s1011_s14, %s1021_s26, %s451_s28, %s832_s17, %s832_s17, %s833_s30  }
 0x28c PF: > { %p645_p7 = scmp.ge.s32.totalorder %s821_s21, 2  ;;  %s485_s23 = sand.u32 1, %s809_s18  }
 0x28d   : > { %p1081_p3 = scmp.ne.s32.totalorder %s1077_s6, 0  ;;  %s486_s7 = scalar_lea.sflag [#allocation4], %s485_s23 }
 0x28f   : > { %p640_p8 = pnand %p645_p7, %p1081_p3 }
 0x291   : > { %p641_p9 = pneg %p640_p8 }
 0x293   : > { %804 = dma.done.wait (%p641_p9), %s486_s7, 128  }
 0x294   : > { %806 = vsyncadd (%p641_p9), %s486_s7, 4294967168  ;;  %p19_p10 = scmp.ge.s32.totalorder %s889_s24, 6   ;;  %s1082_s18 = smov %s813_s19 }
 0x295   : > { %s1083_s19 = smov %s817_s20  ;;  %s1084_s20 = smov %s901_s27 }
 0x296   : > { %s1085_s21 = smov %s889_s24  ;;  %21 = sbr.rel (!%p19_p10) target bundleno = 6 (0x6), region = 89 }
 0x29b   :  { %491 = vsyncpa [#allocation3], 1 }
 0x29c   :  { %493 = vsyncpa [#allocation3 + $0x1], 1 }
 0x29d   :  { %494 = vsyncpa [#allocation6], 1 }
 0x29e   :  { %495 = vsyncpa [#allocation4], 1 }
 0x29f   :  { %497 = vsyncpa [#allocation4 + $0x1], 1 }

// kernel: tpu_custom_call.1
= control target key start
LH: loop header
LB: loop body
LE: loop exit
PB: predicated region body
PF: predicated region fallthrough
CT: control target
= control target key end

     0   :  { %10 = vsyncpa [#allocation3], 0  ;;  %s1067_s0 = inlined_call_operand.hbm [shape: bf16[50,128], index: 0, kind: input, shape index: {}]   ;;  %s1068_s1 = inlined_call_operand.hbm [shape: bf16[128,128], index: 1, kind: input, shape index: {}]   ;;  %s1069_s2 = inlined_call_operand.vmem [shape: f32[1,128], index: 2, kind: input, shape index: {}]   ;;  %s1070_s3 = inlined_call_operand.vmem [shape: f32[1,128], index: 3, kind: input, shape index: {}]   ;;  %s1071_s4 = inlined_call_operand.vmem [shape: f32[1,128], index: 4, kind: input, shape index: {}]   ;;  %s1072_s5 = inlined_call_operand.hbm [shape: bf16[50,128], index: 5, kind: output, shape index: {}]  }
   0x1   :  { %12 = vsyncpa [#allocation3 + $0x1], 0 }
   0x2   :  { %13 = vsyncpa [#allocation6], 0 }
   0x3   :  { %14 = vsyncpa [#allocation4], 0 }
   0x4   :  { %16 = vsyncpa [#allocation4 + $0x1], 0  ;;  %s864_s18 = smov 0   ;;  %s866_s19 = smov 0  }
   0x5   :  { %s868_s20 = smov 0   ;;  %s870_s21 = smov 0  }
   0x6 LB: > { %s885_s22 = sadd.s32 4294967295, %s821_s21   ;;  %s553_s23 = sadd.s32 4294967294, %s821_s21   ;;  %s821_s21 = sphi %s870_s21, %s1085_s21   ;;  %s817_s20 = sphi %s868_s20, %s1084_s20   ;;  %s813_s19 = sphi %s866_s19, %s1083_s19   ;;  %s809_s18 = sphi %s864_s18, %s1082_s18  }
   0x7   : > { %s889_s24 = sadd.s32 1, %s821_s21   ;;  %s29_s25 = sadd.s32 1, %s817_s20 }
   0x8   : > { %s26_s26 = ssub.s32 %s821_s21, %s889_s24  ;;  %p36_p0 = scmp.ne.s32.totalorder %s817_s20, %s813_s19 }
   0x9   : > { %p27_p1 = scmp.eq.s32.totalorder %s26_s26, 0  ;;  %p37_p2 = scmp.eq.s32.totalorder %s821_s21, 0 }
   0xa   : > { %p42_p3 = scmp.ne.s32.totalorder %s813_s19, %s809_s18  ;;  %p43_p4 = scmp.eq.s32.totalorder %s885_s22, 0 }
   0xb   : > { %s901_s27 = scalar_select %p27_p1, %s817_s20, %s29_s25  }
   0xc   : > { %p903_p5 = por %p37_p2, %p36_p0  ;;  %p909_p6 = por %p43_p4, %p42_p3 }
   0xd   : > { %p150_p7 = scmp.eq.s32.totalorder %s885_s22, 3  ;;  %p156_p8 = scmp.eq.s32.totalorder %s553_s23, 3 }
   0xe   : > { %s1075_s29 = scalar_select %p909_p6, 1, 0 }
   0xf   : > { %p554_p9 = scmp.ge.s32.totalorder %s821_s21, 1  ;;  %p163_p10 = scmp.lt.s32.totalorder %s821_s21, 5 }
  0x10   : > { %p916_p11 = por %p150_p7, %p36_p0  ;;  %p920_p12 = por %p156_p8, %p42_p3 }
  0x11   : > { %p924_p13 = pnand %p554_p9, %p163_p10  ;;  %s823_s8 = smov [#allocation5]  }
  0x12   : > { %s1076_s30 = scalar_select %p916_p11, 1, 0 }
  0x13   : > { %s1077_s6 = scalar_select %p920_p12, 1, 0 }
  0x14   : > { %p635_p1 = pneg %p924_p13  ;;  %s175_s9 = sshll.u32 %s823_s8, 4  ;;  %s176_s9 = int_to_ptr.vmem [resolvable:$true] %s175_s9 }
  0x15   : > { %s712_s10 = scalar_lea.vmem %s176_s9, 1024  ;;  %p720_p8 = scmp.lt.s32.totalorder %s176_s9, %s176_s9 }
  0x16   : > { %p636_p2 = pnand %p635_p1, %p43_p4  ;;  %p713_p7 = scmp.ne.s32.totalorder %s176_s9, %s712_s10 }
  0x17   : > { %p721_p6 = scmp.lt.s32.totalorder %s712_s10, %s712_s10 }
  0x18   : > { %p703_p0 = pneg %p636_p2 }
  0x19   : > { %p722_p12 = por %p721_p6, %p720_p8 }
  0x1a   : > { %p715_p11 = pnand %p713_p7, %p703_p0 }
  0x1c   : > { %p716_p3 = pneg %p715_p11 }
  0x1e   : > { %p723_p9 = pnand %p722_p12, %p716_p3 }
  0x20   : > { %726 = shalt.err (!%p723_p9)
}
  0x21   : > { %s824_s11 = smov 64   ;;  %s825_s12 = smov 4  }
  0x22   : > { %638 = dma.hbm_to_vmem [thread:$0]  (!%p636_p2), %s1068_s1, 1024, %s176_s9, [#allocation6], %s824_s11, %s824_s11, %s825_s12  }
  0x23   : > { %p556_p10 = scmp.ge.s32.totalorder %s821_s21, 4 }
  0x25   : > { %194 = sbr.rel (%p556_p10) target bundleno = 74 (0x4a), region = 32 }
  0x2a   : > { %197 = sbr.rel (!%p903_p5) target bundleno = 74 (0x4a), region = 36  ;;  %s198_s15 = sand.u32 (%p903_p5), 1, %s817_s20  }
  0x2b   : > { %s558_s16 = sshll.u32 (%p903_p5), %s821_s21, 1  ;;  %s557_s17 = sshll.u32 (%p903_p5), %s198_s15, 3 }
  0x2c   : > { %s204_s23 = ssub.s32 (%p903_p5), 7, %s558_s16  ;;  %s943_s8 = scalar_lea.sflag (%p903_p5), [#allocation3], %s198_s15 }
  0x2d   : > { %p205_p6 = scmp.lt.s32.totalorder (%p903_p5), %s204_s23, 2  ;;  %s202_s9 = scalar_lea.vmem (%p903_p5), [#allocation2], %s557_s17 }
  0x2f   : > { %s1087_s23 = smov (!%p205_p6, %s204_s23), 2 }
  0x30   : > { %s940_s25 = sshll.u32 %s1087_s23, 6 }
  0x31   : > { %s209_s26 = ssub.s32 128, %s940_s25 }
  0x32   : > { %210 = vsyncadd %s943_s8, %s209_s26  ;;  %p560_p5 = scmp.ne.s32.totalorder %s940_s25, 0  ;;  %s591_s28 = sshll.u32 %s821_s21, 7 }
  0x33   : > { %s951_s12 = scalar_lea.hbm %s1067_s0, %s591_s28  ;;  %s215_s13 = sshll.u32 %s202_s9, 4  ;;  %s953_s13 = int_to_ptr.vmem [resolvable:$true] %s215_s13 }
  0x34   : > { %s727_s14 = scalar_lea.hbm %s951_s12, %s940_s25  ;;  %s731_s17 = scalar_lea.hbm %s1067_s0, 448 }
  0x35   : > { %p728_p11 = scmp.ne.s32.totalorder %s951_s12, %s727_s14  ;;  %p732_p2 = scmp.lt.s32.totalorder %s951_s12, %s1067_s0 }
  0x36   : > { %p733_p0 = scmp.lt.s32.totalorder %s731_s17, %s727_s14 }
  0x37   : > { %p729_p12 = pnand %p728_p11, %p560_p5 }
  0x38   : > { %p734_p7 = por %p733_p0, %p732_p2 }
  0x39   : > { %p730_p1 = pneg %p729_p12 }
  0x3b   : > { %p735_p3 = pnand %p734_p7, %p730_p1 }
  0x3d   : > { %738 = shalt.err (!%p735_p3)
}
  0x3e   : > { %s739_s9 = scalar_lea.vmem %s953_s13, %s940_s25  ;;  %s826_s28 = smov [#allocation2]  }
  0x3f   : > { %p740_p8 = scmp.ne.s32.totalorder %s953_s13, %s739_s9  ;;  %s743_s10 = sshll.u32 %s826_s28, 4  ;;  %s744_s10 = int_to_ptr.vmem [resolvable:$false] %s743_s10 }
  0x40   : > { %s745_s11 = scalar_lea.vmem %s744_s10, 256  ;;  %p746_p6 = scmp.lt.s32.totalorder %s953_s13, %s744_s10 }
  0x41   : > { %p741_p9 = pnand %p740_p8, %p560_p5  ;;  %p747_p11 = scmp.lt.s32.totalorder %s745_s11, %s739_s9 }
  0x43   : > { %p742_p10 = pneg %p741_p9  ;;  %p748_p12 = por %p747_p11, %p746_p6 }
  0x45   : > { %p749_p2 = pnand %p748_p12, %p742_p10 }
  0x47   : > { %752 = shalt.err (!%p749_p2)
}
  0x48   : > { %s827_s14 = smov 64   ;;  %s828_s15 = smov 4  }
  0x49   : > { %221 = dma.hbm_to_vmem [thread:$0]  (%p560_p5), %s951_s12, %s940_s25, %s953_s13, %s943_s8, %s827_s14, %s827_s14, %s828_s15  }
  0x4a PF: > { %227 = sbr.rel (%p924_p13) target bundleno = 652 (0x28c), region = 40  ;;  %s982_s16 = sand.u32 (!%p924_p13), 1, %s813_s19  }
  0x4b   : > { %s565_s17 = sshll.u32 (!%p924_p13), %s982_s16, 3  ;;  %s230_s23 = scalar_lea.sflag (!%p924_p13), [#allocation3], %s982_s16 }
  0x4c   : > { %s233_s26 = scalar_lea.vmem (!%p924_p13), [#allocation2], %s565_s17  ;;  %p1079_p1 = scmp.ne.s32.totalorder (!%p924_p13), %s1075_s29, 0 }
  0x4f   : > { %796 = dma.done.wait (%p1079_p1), %s230_s23, 128  }
  0x50   : > { %798 = vsyncadd (%p1079_p1), %s230_s23, 4294967168 }
  0x51   : > { %800 = dma.done.wait (%p43_p4), [#allocation6], 1024  }
  0x52   : > { %802 = vsyncadd (%p43_p4), [#allocation6], 4294966272  ;;  %v829_v0 = vmov 0.0   ;;  %vm830_vm0 = vmmov 0   ;;  %v687_v1 = vld [vmem:[#allocation5 + $0x38] sm:$0xff]   ;;  %v688_v2 = vld [vmem:[#allocation5 + $0x30] sm:$0xff]  }
  0x53   : > { %609 = vmatprep.subr.bf16.mxu0 %v829_v0  ;;  %625 = vmatprep.mubr.msk.bf16.mxu0 %vm830_vm0, %v829_v0  ;;  %v689_v3 = vld [vmem:[#allocation5 + $0x28] sm:$0xff]   ;;  %v690_v4 = vld [vmem:[#allocation5 + $0x20] sm:$0xff]   ;;  %v691_v5 = vld [vmem:[#allocation5 + $0x18] sm:$0xff]   ;;  %s263_s9 = scalar_lea.vmem [#allocation7], %s565_s17  ;;  %s451_s28 = scalar_lea.sflag [#allocation4], %s982_s16 }
  0x54   : > { %610 = vmatpush3.bf16.msra.mxu0 %v687_v1  ;;  %v692_v6 = vld [vmem:[#allocation5 + $0x10] sm:$0xff]   ;;  %v693_v7 = vld [vmem:[#allocation5 + $0x8] sm:$0xff]   ;;  %v694_v8 = vld [vmem:[#allocation5] sm:$0xff]   ;;  %p1080_p4 = scmp.ne.s32.totalorder %s1076_s30, 0 }
  0x55   : > { %611 = vmatprep.subr.bf16.mxu0 %v829_v0  ;;  %v275_v9 = vld [vmem:[%s233_s26] sm:$0xff]   ;;  %s583_s10 = sshll.u32 (%p1080_p4), %s885_s22, 1 }
  0x56   : > { %v568_v10 = vld [vmem:[%s1069_s2] ss:$0 sm:$0xff]  ;;  %v395_v11 = vunpack.c.l.bf16 %v275_v9  ;;  %v396_v16 = vunpack.c.h.bf16 %v275_v9  ;;  %s459_s11 = ssub.s32 (%p1080_p4), 7, %s583_s10 }
  0x57   : > { %v578_v37 = vld [vmem:[%s1070_s3] ss:$0 sm:$0xff]  ;;  %p460_p13 = scmp.lt.s32.totalorder (%p1080_p4), %s459_s11, 2 }
  0x58   : > { %612 = vmatpush3.bf16.msra.mxu0 %v688_v2  ;;  %v579_v41 = vld [vmem:[%s1071_s4] ss:$0 sm:$0xff] }
  0x59   : > { %613 = vmatprep.subr.bf16.mxu0 %v829_v0 }
  0x5c   : > { %614 = vmatpush3.bf16.msra.mxu0 %v689_v3 }
  0x5d   : > { %615 = vmatprep.subr.bf16.mxu0 %v829_v0 }
  0x60   : > { %616 = vmatpush3.bf16.msra.mxu0 %v690_v4 }
  0x61   : > { %617 = vmatprep.subr.bf16.mxu0 %v829_v0 }
  0x64   : > { %618 = vmatpush3.bf16.msra.mxu0 %v691_v5 }
  0x65   : > { %619 = vmatprep.subr.bf16.mxu0 %v829_v0 }
  0x68   : > { %620 = vmatpush3.bf16.msra.mxu0 %v692_v6 }
  0x69   : > { %621 = vmatprep.subr.bf16.mxu0 %v829_v0 }
  0x6c   : > { %622 = vmatpush3.bf16.msra.mxu0 %v693_v7 }
  0x6d   : > { %623 = vmatprep.subr.bf16.mxu0 %v829_v0 }
  0x70   : > { %624 = vmatpush3.bf16.msra.mxu0 %v694_v8 }
  0x73   : > { %626 = vmatmul.mubr.bf16.vlgmr.msra.gmra.mxu0 %v275_v9 }
 0x133   : > { %v388_v12 = vpop.f32.mrf.mxu0 }
 0x134   : > { %v389_v13 = vadd.f32 %v568_v10, %v388_v12 }
 0x135   : > { %v627_v14 = vpop.f32.mrf.mxu0 }
 0x136   : > { %v397_v15 = vadd.f32 %v395_v11, %v389_v13 }
 0x137   : > { %v391_v17 = vpop.f32.mrf.mxu0 }
 0x138   : > { %v392_v18 = vadd.f32 %v568_v10, %v391_v17  ;;  %399 = vadd.xlane.f32.xlu0 %v397_v15 }
 0x139   : > { %v628_v19 = vpop.f32.mrf.mxu0 }
 0x13a   : > { %v398_v20 = vadd.f32 %v396_v16, %v392_v18 }
 0x13c   : > { %401 = vadd.xlane.f32.xlu0 %v398_v20 }
 0x1c1   : > { %v400_v21 = vpop.xlane.xlu0 %399 }
 0x1c2   : > { %v404_v22 = vmul.f32 0.0078125, %v400_v21 }
 0x1c4   : > { %v406_v23 = vsub.f32 %v397_v15, %v404_v22 }
 0x1c5   : > { %v402_v24 = vpop.xlane.xlu0 %401 }
 0x1c6   : > { %v405_v25 = vmul.f32 0.0078125, %v402_v24  ;;  %v408_v26 = vmul.f32 %v406_v23, %v406_v23 }
 0x1c8   : > { %v407_v27 = vsub.f32 %v398_v20, %v405_v25  ;;  %410 = vadd.xlane.f32.xlu1 %v408_v26 }
 0x1ca   : > { %v409_v28 = vmul.f32 %v407_v27, %v407_v27 }
 0x1cc   : > { %412 = vadd.xlane.f32.xlu1 %v409_v28 }
 0x251   : > { %v411_v29 = vpop.xlane.xlu1 %410 }
 0x252   : > { %v414_v30 = vmul.f32 0.0078125, %v411_v29 }
 0x254   : > { %v416_v31 = vadd.f32 1e-05, %v414_v30 }
 0x255   : > { %v413_v32 = vpop.xlane.xlu1 %412 }
 0x256   : > { %697 = vrsqrt.f32 %v416_v31  ;;  %v415_v33 = vmul.f32 0.0078125, %v413_v32 }
 0x258   : > { %v417_v34 = vadd.f32 1e-05, %v415_v33 }
 0x25a   : > { %699 = vrsqrt.f32 %v417_v34 }
 0x263   : > { %v698_v35 = vpop.eup %697 }
 0x264   : > { %v420_v36 = vmul.f32 %v698_v35, %v406_v23 }
 0x266   : > { %v429_v39 = vmul.f32 %v578_v37, %v420_v36 }
 0x267   : > { %v700_v38 = vpop.eup %699 }
 0x268   : > { %v421_v40 = vmul.f32 %v700_v38, %v407_v27  ;;  %v438_v43 = vadd.f32 %v579_v41, %v429_v39 }
 0x26a   : > { %v430_v42 = vmul.f32 %v578_v37, %v421_v40 }
 0x26c   : > { %v439_v44 = vadd.f32 %v579_v41, %v430_v42  ;;  %457 = sbr.rel (!%p1080_p4) target bundleno = 652 (0x28c), region = 52 }
 0x26e   : > { %v598_v45 = vpack.c.bf16 %v439_v44, %v438_v43 }
 0x270   : > { %599 = vst [vmem:[%s263_s9] sm:$0xff] %v598_v45  }
 0x271   : > { %s1089_s11 = smov (!%p460_p13, %s459_s11), 2 }
 0x272   : > { %s1011_s14 = sshll.u32 %s1089_s11, 6 }
 0x273   : > { %s464_s15 = ssub.s32 128, %s1011_s14 }
 0x274   : > { %465 = vsyncadd %s451_s28, %s464_s15  ;;  %p585_p5 = scmp.ne.s32.totalorder %s1011_s14, 0  ;;  %s594_s17 = sshll.u32 %s885_s22, 7 }
 0x275   : > { %s1021_s26 = scalar_lea.hbm %s1072_s5, %s594_s17  ;;  %s470_s29 = sshll.u32 %s263_s9, 4  ;;  %s1023_s29 = int_to_ptr.vmem [resolvable:$true] %s470_s29 }
 0x276   : > { %s753_s7 = scalar_lea.vmem %s1023_s29, %s1011_s14  ;;  %s831_s25 = smov [#allocation7]  }
 0x277   : > { %p754_p0 = scmp.ne.s32.totalorder %s1023_s29, %s753_s7  ;;  %s757_s8 = sshll.u32 %s831_s25, 4  ;;  %s758_s8 = int_to_ptr.vmem [resolvable:$false] %s757_s8 }
 0x278   : > { %s759_s22 = scalar_lea.vmem %s758_s8, 256  ;;  %p760_p8 = scmp.lt.s32.totalorder %s1023_s29, %s758_s8 }
 0x279   : > { %p755_p7 = pnand %p754_p0, %p585_p5  ;;  %p761_p9 = scmp.lt.s32.totalorder %s759_s22, %s753_s7 }
 0x27b   : > { %p756_p3 = pneg %p755_p7  ;;  %p762_p10 = por %p761_p9, %p760_p8 }
 0x27d   : > { %p763_p6 = pnand %p762_p10, %p756_p3 }
 0x27f   : > { %766 = shalt.err (!%p763_p6)
}
 0x280   : > { %s767_s12 = scalar_lea.hbm %s1021_s26, %s1011_s14  ;;  %s771_s10 = scalar_lea.hbm %s1072_s5, 448 }
 0x281   : > { %p768_p11 = scmp.ne.s32.totalorder %s1021_s26, %s767_s12  ;;  %p772_p1 = scmp.lt.s32.totalorder %s1021_s26, %s1072_s5 }
 0x282   : > { %p773_p4 = scmp.lt.s32.totalorder %s771_s10, %s767_s12 }
 0x283   : > { %p769_p12 = pnand %p768_p11, %p585_p5 }
 0x284   : > { %p774_p13 = por %p773_p4, %p772_p1 }
 0x285   : > { %p770_p2 = pneg %p769_p12 }
 0x287   : > { %p775_p0 = pnand %p774_p13, %p770_p2 }
 0x289   : > { %778 = shalt.err (!%p775_p0)
}
 0x28a   : > { %s832_s17 = smov 64   ;;  %s833_s30 = smov 4  }
 0x28b   : > { %476 = dma.vmem_to_hbm [thread:$0]  (%p585_p5), %s1023_s29, %s1011_s14, %s1021_s26, %s451_s28, %s832_s17, %s832_s17, %s833_s30  }
 0x28c PF: > { %p645_p7 = scmp.ge.s32.totalorder %s821_s21, 2  ;;  %s485_s23 = sand.u32 1, %s809_s18  }
 0x28d   : > { %p1081_p3 = scmp.ne.s32.totalorder %s1077_s6, 0  ;;  %s486_s7 = scalar_lea.sflag [#allocation4], %s485_s23 }
 0x28f   : > { %p640_p8 = pnand %p645_p7, %p1081_p3 }
 0x291   : > { %p641_p9 = pneg %p640_p8 }
 0x293   : > { %804 = dma.done.wait (%p641_p9), %s486_s7, 128  }
 0x294   : > { %806 = vsyncadd (%p641_p9), %s486_s7, 4294967168  ;;  %p19_p10 = scmp.ge.s32.totalorder %s889_s24, 6   ;;  %s1082_s18 = smov %s813_s19 }
 0x295   : > { %s1083_s19 = smov %s817_s20  ;;  %s1084_s20 = smov %s901_s27 }
 0x296   : > { %s1085_s21 = smov %s889_s24  ;;  %21 = sbr.rel (!%p19_p10) target bundleno = 6 (0x6), region = 89 }
 0x29b   :  { %491 = vsyncpa [#allocation3], 1 }
 0x29c   :  { %493 = vsyncpa [#allocation3 + $0x1], 1 }
 0x29d   :  { %494 = vsyncpa [#allocation6], 1 }
 0x29e   :  { %495 = vsyncpa [#allocation4], 1 }
 0x29f   :  { %497 = vsyncpa [#allocation4 + $0x1], 1 }

</bundles_post_ra>
